<compile_context>
chip_gen: v5e
topology: v5e:2x2
jax: 0.10.0
libtpu: 0.0.40
codegen_flags: <defaults>
</compile_context>

<pallas_src>
import jax
import jax.numpy as jnp
from jax import lax
from jax.experimental import pallas as pl
from jax.experimental.pallas import tpu as pltpu

EPS = 1e-5


def _round_up(x, m=8):
    return ((x + m - 1) // m) * m


def _slab_layout(embedding_dim, action_dim, hidden_dim, n_layers):
    """Static, 8-aligned row offsets of each parameter chunk in the packed slab."""
    E, A, H = embedding_dim, action_dim, hidden_dim
    w_offs = []
    off = 0
    for d_in in [E + A] + [H] * n_layers:        # Linear weights of the BN blocks
        w_offs.append(off)
        off = _round_up(off + d_in)
    bn_off = off                                 # gamma/beta rows, 2 per block
    off = _round_up(off + 2 * (n_layers + 1))
    w_out_off = off                              # final Linear weight (H, E)
    off = _round_up(off + H)
    b_out_off = off                              # final Linear bias (1, E)
    rows = _round_up(off + 1)
    return {"w_blocks": w_offs, "bn": bn_off, "w_out": w_out_off,
            "b_out": b_out_off, "rows": rows, "width": max(H, E)}


def pack_params(params, embedding_dim, action_dim, hidden_dim, n_layers=2):
    """Pack every parameter into ONE dense f32 slab (a single input DMA).

    Linear biases b1..b_{n_layers+1} of the BN blocks are intentionally not
    packed: train-mode BatchNorm subtracts the batch mean, which cancels them.
    """
    L = _slab_layout(embedding_dim, action_dim, hidden_dim, n_layers)
    n_blocks = n_layers + 1
    slab = jnp.zeros((L["rows"], L["width"]), jnp.float32)

    def put(s, off, arr):
        r, c = arr.shape
        return s.at[off:off + r, :c].set(arr)

    for k in range(n_blocks):
        slab = put(slab, L["w_blocks"][k], params[f"w{k + 1}"])
    bn_rows = []
    for k in range(n_blocks):
        bn_rows += [params[f"g{k + 1}"], params[f"be{k + 1}"]]
    slab = put(slab, L["bn"], jnp.concatenate(bn_rows, axis=0))
    slab = put(slab, L["w_out"], params[f"w{n_blocks + 1}"])
    slab = put(slab, L["b_out"], params[f"b{n_blocks + 1}"])
    return {"slab": slab, "embedding_dim": embedding_dim, "action_dim": action_dim,
            "hidden_dim": hidden_dim, "n_layers": n_layers}


def forward_dynamics_model(embedding, action, packed):
    """Fused MLP forward.

    Accepts a single invocation, embedding (B, E) / action (B, A), or a stack of
    T independent invocations (T, B, E) / (T, B, A) that runs as a grid=(T,)
    pipeline in ONE pallas_call (BN statistics are per-step over B).
    """
    squeeze = embedding.ndim == 2
    if squeeze:
        embedding, action = embedding[None], action[None]
    embedding = embedding.astype(jnp.float32)
    action = action.astype(jnp.float32)

    T, B, E = embedding.shape
    A = action.shape[-1]
    H = packed["hidden_dim"]
    n_layers = packed["n_layers"]
    n_blocks = n_layers + 1
    assert E == packed["embedding_dim"] and A == packed["action_dim"]
    slab = packed["slab"]
    L = _slab_layout(E, A, H, n_layers)

    def kernel(emb_ref, act_ref, p_ref, out_ref):
        emb = emb_ref[...]                      # (B, E) f32
        act = act_ref[...]                      # (B, A) f32

        def mxu(a, b):
            # Single-pass bf16 MXU matmul with f32 accumulation.
            return jnp.dot(a.astype(jnp.bfloat16), b.astype(jnp.bfloat16),
                           preferred_element_type=jnp.float32)

        def bn_relu(y, k):
            # Train-mode BatchNorm1d over the batch axis + ReLU.
            # Two-pass variance for numerical robustness (correctness review).
            g = p_ref[L["bn"] + 2 * k:L["bn"] + 2 * k + 1, :H]
            be = p_ref[L["bn"] + 2 * k + 1:L["bn"] + 2 * k + 2, :H]
            mu = jnp.mean(y, axis=0, keepdims=True)
            yc = y - mu
            var = jnp.mean(yc * yc, axis=0, keepdims=True)
            return jnp.maximum(yc * (g * lax.rsqrt(var + EPS)) + be, 0.0)

        for k in range(n_blocks):               # static unroll over blocks
            off = L["w_blocks"][k]
            if k == 0:
                # Fused concat: embedding part on the MXU, action part on VPU.
                y = mxu(emb, p_ref[off:off + E, :H])
                if A == 1:
                    y = y + act * p_ref[off + E:off + E + 1, :H]
                else:
                    y = y + mxu(act, p_ref[off + E:off + E + A, :H])
            else:
                y = mxu(h, p_ref[off:off + H, :H])
            h = bn_relu(y, k)                   # linear bias cancelled by BN mean

        out = (mxu(h, p_ref[L["w_out"]:L["w_out"] + H, :E])
               + p_ref[L["b_out"]:L["b_out"] + 1, :E])
        out_ref[...] = out.astype(out_ref.dtype)

    out = pl.pallas_call(
        kernel,
        out_shape=jax.ShapeDtypeStruct((T, B, E), jnp.float32),
        grid=(T,),
        in_specs=[
            pl.BlockSpec((None, B, E), lambda t: (t, 0, 0)),   # embedding, step t
            pl.BlockSpec((None, B, A), lambda t: (t, 0, 0)),   # action, step t
            pl.BlockSpec(slab.shape, lambda t: (0, 0)),        # one constant slab
        ],
        out_specs=pl.BlockSpec((None, B, E), lambda t: (t, 0, 0)),
        compiler_params=pltpu.CompilerParams(
            dimension_semantics=("parallel",)),   # v7x: split steps over 2 TCs
    )(embedding, action, slab)
    return out[0] if squeeze else out


def init_params(key, embedding_dim, action_dim, hidden_dim, n_layers=2):
    """Deterministic synthetic params. Linear weights stored as (in, out)."""
    dims = [embedding_dim + action_dim] + [hidden_dim] * (n_layers + 1)
    params = {}
    keys = jax.random.split(key, 4 * len(dims) + 2)
    ki = 0
    for idx, (d_in, d_out) in enumerate(zip(dims[:-1], dims[1:]), start=1):
        params[f"w{idx}"] = (jax.random.normal(keys[ki], (d_in, d_out), jnp.float32)
                             * (1.0 / jnp.sqrt(d_in))); ki += 1
        params[f"b{idx}"] = jax.random.normal(keys[ki], (1, d_out), jnp.float32) * 0.01; ki += 1
        # Perturbed BN affine so gamma/beta handling is actually exercised.
        params[f"g{idx}"] = 1.0 + 0.1 * jax.random.normal(keys[ki], (1, d_out), jnp.float32); ki += 1
        params[f"be{idx}"] = 0.1 * jax.random.normal(keys[ki], (1, d_out), jnp.float32); ki += 1
    last = len(dims)
    params[f"w{last}"] = (jax.random.normal(keys[ki], (hidden_dim, embedding_dim), jnp.float32)
                          * (1.0 / jnp.sqrt(hidden_dim))); ki += 1
    params[f"b{last}"] = jax.random.normal(keys[ki], (1, embedding_dim), jnp.float32) * 0.01
    return params


def reference_forward(embedding, action, params, n_layers=2, mxu_bf16=False):
    """Pure-JAX reference matching PyTorch train-mode semantics (keeps b1..bN,
    explicit concat, two-pass variance).  mxu_bf16=True mirrors the kernel's
    bf16 MXU operands (f32 accumulation), isolating structural correctness from
    matmul precision."""
    def mm(a, b):
        if mxu_bf16:
            a, b = a.astype(jnp.bfloat16), b.astype(jnp.bfloat16)
        return jnp.dot(a, b, preferred_element_type=jnp.float32)

    h = jnp.concatenate([embedding, action], axis=1)
    for k in range(1, n_layers + 2):
        y = mm(h, params[f"w{k}"]) + params[f"b{k}"]
        mu = jnp.mean(y, axis=0, keepdims=True)
        var = jnp.mean((y - mu) ** 2, axis=0, keepdims=True)
        y = (y - mu) / jnp.sqrt(var + EPS) * params[f"g{k}"] + params[f"be{k}"]
        h = jnp.maximum(y, 0.0)
    last = n_layers + 2
    return mm(h, params[f"w{last}"]) + params[f"b{last}"]


if __name__ == "__main__":
    T, B = 4, 8                     # T independent invocations amortized in one call
    embedding_dim, action_dim, hidden_dim, n_layers = 32, 1, 32, 2

    key = jax.random.PRNGKey(0)
    k_emb, k_act, k_par = jax.random.split(key, 3)
    embedding = jax.random.normal(k_emb, (T, B, embedding_dim), jnp.float32)
    action = jax.random.normal(k_act, (T, B, action_dim), jnp.float32)
    params = init_params(k_par, embedding_dim, action_dim, hidden_dim, n_layers)
    packed = pack_params(params, embedding_dim, action_dim, hidden_dim, n_layers)

    out = forward_dynamics_model(embedding, action, packed)
    out = jax.block_until_ready(out)
    assert out.shape == (T, B, embedding_dim)

    # Structural check: reference mirroring the kernel's bf16 MXU precision.
    ref_bf16 = jnp.stack([reference_forward(embedding[t], action[t], params,
                                            n_layers, mxu_bf16=True)
                          for t in range(T)])
    # Precision sanity check: pure-f32 reference (loose tol because the kernel
    # uses single-pass bf16 MXU operands, as requested by the perf review).
    ref_f32 = jnp.stack([reference_forward(embedding[t], action[t], params,
                                           n_layers, mxu_bf16=False)
                         for t in range(T)])
    assert jnp.allclose(out, ref_bf16, atol=3e-2, rtol=3e-2), "mismatch vs bf16-matmul reference"
    assert jnp.allclose(out, ref_f32, atol=1e-1, rtol=1e-1), "mismatch vs f32 reference"

    print("KERNEL_OK")
</pallas_src>

<mosaic_0001>
module attributes {stable_mosaic.version = 11 : i64} {
  func.func @kernel(%arg0: i32, %arg1: memref<1x8x32xf32, #tpu.memory_space<vmem>>, %arg2: memref<1x8x1xf32, #tpu.memory_space<vmem>>, %arg3: memref<152x32xf32, #tpu.memory_space<vmem>>, %arg4: memref<1x8x32xf32, #tpu.memory_space<vmem>>) attributes {dimension_semantics = [#tpu.dimension_semantics<parallel>], iteration_bounds = array<i64: 4>, scalar_prefetch = 0 : i64, scratch_operands = 0 : i64, tpu.core_type = #tpu.core_type<tc>, window_params = [{transform_indices = @transform_0, window_bounds = array<i64: 1, 8, 32>}, {transform_indices = @transform_1, window_bounds = array<i64: 1, 8, 1>}, {pipeline_mode = #tpu.pipeline_mode<synchronous>, transform_indices = @transform_2, window_bounds = array<i64: 152, 32>}, {transform_indices = @transform_3, window_bounds = array<i64: 1, 8, 32>}]} {
    %c0 = arith.constant 0 : index
    %c0_0 = arith.constant 0 : index
    %c0_1 = arith.constant 0 : index
    %0 = vector.load %arg1[%c0, %c0_0, %c0_1] : memref<1x8x32xf32, #tpu.memory_space<vmem>>, vector<1x8x32xf32>
    %1 = vector.shape_cast %0 : vector<1x8x32xf32> to vector<8x32xf32>
    %c0_2 = arith.constant 0 : index
    %c0_3 = arith.constant 0 : index
    %c0_4 = arith.constant 0 : index
    %2 = vector.load %arg2[%c0_2, %c0_3, %c0_4] : memref<1x8x1xf32, #tpu.memory_space<vmem>>, vector<1x8x1xf32>
    %3 = vector.shape_cast %2 : vector<1x8x1xf32> to vector<8x1xf32>
    %c0_5 = arith.constant 0 : index
    %c0_6 = arith.constant 0 : index
    %4 = vector.load %arg3[%c0_5, %c0_6] : memref<152x32xf32, #tpu.memory_space<vmem>>, vector<32x32xf32>
    %5 = arith.truncf %1 : vector<8x32xf32> to vector<8x32xbf16>
    %6 = arith.truncf %4 : vector<32x32xf32> to vector<32x32xbf16>
    %cst = arith.constant dense<0.000000e+00> : vector<8x32xf32>
    %7 = tpu.matmul %5, %6, %cst {dimension_numbers = #tpu.dot_dimension_numbers<[1], [0], [0], [1], [0, 0, 1, 1], [], []>} : vector<8x32xbf16>, vector<32x32xbf16>, vector<8x32xf32> -> vector<8x32xf32>
    %c32 = arith.constant 32 : index
    %c0_7 = arith.constant 0 : index
    %8 = vector.load %arg3[%c32, %c0_7] : memref<152x32xf32, #tpu.memory_space<vmem>>, vector<1x32xf32>
    %9 = vector.broadcast %3 : vector<8x1xf32> to vector<8x32xf32>
    %10 = vector.broadcast %8 : vector<1x32xf32> to vector<8x32xf32>
    %11 = arith.mulf %9, %10 : vector<8x32xf32>
    %12 = arith.addf %7, %11 : vector<8x32xf32>
    %c104 = arith.constant 104 : index
    %c0_8 = arith.constant 0 : index
    %13 = vector.load %arg3[%c104, %c0_8] : memref<152x32xf32, #tpu.memory_space<vmem>>, vector<1x32xf32>
    %c105 = arith.constant 105 : index
    %c0_9 = arith.constant 0 : index
    %14 = vector.load %arg3[%c105, %c0_9] : memref<152x32xf32, #tpu.memory_space<vmem>>, vector<1x32xf32>
    %cst_10 = arith.constant dense<0.000000e+00> : vector<32xf32>
    %15 = vector.multi_reduction <add>, %12, %cst_10 [0] : vector<8x32xf32> to vector<32xf32>
    %16 = vector.shape_cast %15 : vector<32xf32> to vector<1x32xf32>
    %cst_11 = arith.constant 8.000000e+00 : f32
    %17 = vector.broadcast %cst_11 : f32 to vector<1x32xf32>
    %18 = arith.divf %16, %17 : vector<1x32xf32>
    %19 = vector.broadcast %18 : vector<1x32xf32> to vector<8x32xf32>
    %20 = arith.subf %12, %19 : vector<8x32xf32>
    %21 = arith.mulf %20, %20 : vector<8x32xf32>
    %cst_12 = arith.constant dense<0.000000e+00> : vector<32xf32>
    %22 = vector.multi_reduction <add>, %21, %cst_12 [0] : vector<8x32xf32> to vector<32xf32>
    %23 = vector.shape_cast %22 : vector<32xf32> to vector<1x32xf32>
    %cst_13 = arith.constant 8.000000e+00 : f32
    %24 = vector.broadcast %cst_13 : f32 to vector<1x32xf32>
    %25 = arith.divf %23, %24 : vector<1x32xf32>
    %cst_14 = arith.constant 9.99999974E-6 : f32
    %26 = vector.broadcast %cst_14 : f32 to vector<1x32xf32>
    %27 = arith.addf %25, %26 : vector<1x32xf32>
    %28 = math.rsqrt %27 : vector<1x32xf32>
    %29 = arith.mulf %13, %28 : vector<1x32xf32>
    %30 = vector.broadcast %29 : vector<1x32xf32> to vector<8x32xf32>
    %31 = arith.mulf %20, %30 : vector<8x32xf32>
    %32 = vector.broadcast %14 : vector<1x32xf32> to vector<8x32xf32>
    %33 = arith.addf %31, %32 : vector<8x32xf32>
    %cst_15 = arith.constant 0.000000e+00 : f32
    %34 = vector.broadcast %cst_15 : f32 to vector<8x32xf32>
    %35 = arith.maximumf %33, %34 : vector<8x32xf32>
    %c40 = arith.constant 40 : index
    %c0_16 = arith.constant 0 : index
    %36 = vector.load %arg3[%c40, %c0_16] : memref<152x32xf32, #tpu.memory_space<vmem>>, vector<32x32xf32>
    %37 = arith.truncf %35 : vector<8x32xf32> to vector<8x32xbf16>
    %38 = arith.truncf %36 : vector<32x32xf32> to vector<32x32xbf16>
    %cst_17 = arith.constant dense<0.000000e+00> : vector<8x32xf32>
    %39 = tpu.matmul %37, %38, %cst_17 {dimension_numbers = #tpu.dot_dimension_numbers<[1], [0], [0], [1], [0, 0, 1, 1], [], []>} : vector<8x32xbf16>, vector<32x32xbf16>, vector<8x32xf32> -> vector<8x32xf32>
    %c106 = arith.constant 106 : index
    %c0_18 = arith.constant 0 : index
    %40 = vector.load %arg3[%c106, %c0_18] : memref<152x32xf32, #tpu.memory_space<vmem>>, vector<1x32xf32>
    %c107 = arith.constant 107 : index
    %c0_19 = arith.constant 0 : index
    %41 = vector.load %arg3[%c107, %c0_19] : memref<152x32xf32, #tpu.memory_space<vmem>>, vector<1x32xf32>
    %cst_20 = arith.constant dense<0.000000e+00> : vector<32xf32>
    %42 = vector.multi_reduction <add>, %39, %cst_20 [0] : vector<8x32xf32> to vector<32xf32>
    %43 = vector.shape_cast %42 : vector<32xf32> to vector<1x32xf32>
    %cst_21 = arith.constant 8.000000e+00 : f32
    %44 = vector.broadcast %cst_21 : f32 to vector<1x32xf32>
    %45 = arith.divf %43, %44 : vector<1x32xf32>
    %46 = vector.broadcast %45 : vector<1x32xf32> to vector<8x32xf32>
    %47 = arith.subf %39, %46 : vector<8x32xf32>
    %48 = arith.mulf %47, %47 : vector<8x32xf32>
    %cst_22 = arith.constant dense<0.000000e+00> : vector<32xf32>
    %49 = vector.multi_reduction <add>, %48, %cst_22 [0] : vector<8x32xf32> to vector<32xf32>
    %50 = vector.shape_cast %49 : vector<32xf32> to vector<1x32xf32>
    %cst_23 = arith.constant 8.000000e+00 : f32
    %51 = vector.broadcast %cst_23 : f32 to vector<1x32xf32>
    %52 = arith.divf %50, %51 : vector<1x32xf32>
    %cst_24 = arith.constant 9.99999974E-6 : f32
    %53 = vector.broadcast %cst_24 : f32 to vector<1x32xf32>
    %54 = arith.addf %52, %53 : vector<1x32xf32>
    %55 = math.rsqrt %54 : vector<1x32xf32>
    %56 = arith.mulf %40, %55 : vector<1x32xf32>
    %57 = vector.broadcast %56 : vector<1x32xf32> to vector<8x32xf32>
    %58 = arith.mulf %47, %57 : vector<8x32xf32>
    %59 = vector.broadcast %41 : vector<1x32xf32> to vector<8x32xf32>
    %60 = arith.addf %58, %59 : vector<8x32xf32>
    %cst_25 = arith.constant 0.000000e+00 : f32
    %61 = vector.broadcast %cst_25 : f32 to vector<8x32xf32>
    %62 = arith.maximumf %60, %61 : vector<8x32xf32>
    %c72 = arith.constant 72 : index
    %c0_26 = arith.constant 0 : index
    %63 = vector.load %arg3[%c72, %c0_26] : memref<152x32xf32, #tpu.memory_space<vmem>>, vector<32x32xf32>
    %64 = arith.truncf %62 : vector<8x32xf32> to vector<8x32xbf16>
    %65 = arith.truncf %63 : vector<32x32xf32> to vector<32x32xbf16>
    %cst_27 = arith.constant dense<0.000000e+00> : vector<8x32xf32>
    %66 = tpu.matmul %64, %65, %cst_27 {dimension_numbers = #tpu.dot_dimension_numbers<[1], [0], [0], [1], [0, 0, 1, 1], [], []>} : vector<8x32xbf16>, vector<32x32xbf16>, vector<8x32xf32> -> vector<8x32xf32>
    %c108 = arith.constant 108 : index
    %c0_28 = arith.constant 0 : index
    %67 = vector.load %arg3[%c108, %c0_28] : memref<152x32xf32, #tpu.memory_space<vmem>>, vector<1x32xf32>
    %c109 = arith.constant 109 : index
    %c0_29 = arith.constant 0 : index
    %68 = vector.load %arg3[%c109, %c0_29] : memref<152x32xf32, #tpu.memory_space<vmem>>, vector<1x32xf32>
    %cst_30 = arith.constant dense<0.000000e+00> : vector<32xf32>
    %69 = vector.multi_reduction <add>, %66, %cst_30 [0] : vector<8x32xf32> to vector<32xf32>
    %70 = vector.shape_cast %69 : vector<32xf32> to vector<1x32xf32>
    %cst_31 = arith.constant 8.000000e+00 : f32
    %71 = vector.broadcast %cst_31 : f32 to vector<1x32xf32>
    %72 = arith.divf %70, %71 : vector<1x32xf32>
    %73 = vector.broadcast %72 : vector<1x32xf32> to vector<8x32xf32>
    %74 = arith.subf %66, %73 : vector<8x32xf32>
    %75 = arith.mulf %74, %74 : vector<8x32xf32>
    %cst_32 = arith.constant dense<0.000000e+00> : vector<32xf32>
    %76 = vector.multi_reduction <add>, %75, %cst_32 [0] : vector<8x32xf32> to vector<32xf32>
    %77 = vector.shape_cast %76 : vector<32xf32> to vector<1x32xf32>
    %cst_33 = arith.constant 8.000000e+00 : f32
    %78 = vector.broadcast %cst_33 : f32 to vector<1x32xf32>
    %79 = arith.divf %77, %78 : vector<1x32xf32>
    %cst_34 = arith.constant 9.99999974E-6 : f32
    %80 = vector.broadcast %cst_34 : f32 to vector<1x32xf32>
    %81 = arith.addf %79, %80 : vector<1x32xf32>
    %82 = math.rsqrt %81 : vector<1x32xf32>
    %83 = arith.mulf %67, %82 : vector<1x32xf32>
    %84 = vector.broadcast %83 : vector<1x32xf32> to vector<8x32xf32>
    %85 = arith.mulf %74, %84 : vector<8x32xf32>
    %86 = vector.broadcast %68 : vector<1x32xf32> to vector<8x32xf32>
    %87 = arith.addf %85, %86 : vector<8x32xf32>
    %cst_35 = arith.constant 0.000000e+00 : f32
    %88 = vector.broadcast %cst_35 : f32 to vector<8x32xf32>
    %89 = arith.maximumf %87, %88 : vector<8x32xf32>
    %c112 = arith.constant 112 : index
    %c0_36 = arith.constant 0 : index
    %90 = vector.load %arg3[%c112, %c0_36] : memref<152x32xf32, #tpu.memory_space<vmem>>, vector<32x32xf32>
    %91 = arith.truncf %89 : vector<8x32xf32> to vector<8x32xbf16>
    %92 = arith.truncf %90 : vector<32x32xf32> to vector<32x32xbf16>
    %cst_37 = arith.constant dense<0.000000e+00> : vector<8x32xf32>
    %93 = tpu.matmul %91, %92, %cst_37 {dimension_numbers = #tpu.dot_dimension_numbers<[1], [0], [0], [1], [0, 0, 1, 1], [], []>} : vector<8x32xbf16>, vector<32x32xbf16>, vector<8x32xf32> -> vector<8x32xf32>
    %c144 = arith.constant 144 : index
    %c0_38 = arith.constant 0 : index
    %94 = vector.load %arg3[%c144, %c0_38] : memref<152x32xf32, #tpu.memory_space<vmem>>, vector<1x32xf32>
    %95 = vector.broadcast %94 : vector<1x32xf32> to vector<8x32xf32>
    %96 = arith.addf %93, %95 : vector<8x32xf32>
    %c0_39 = arith.constant 0 : index
    %c0_40 = arith.constant 0 : index
    %c0_41 = arith.constant 0 : index
    %97 = vector.load %arg4[%c0_39, %c0_40, %c0_41] : memref<1x8x32xf32, #tpu.memory_space<vmem>>, vector<1x8x32xf32>
    %98 = vector.shape_cast %97 : vector<1x8x32xf32> to vector<8x32xf32>
    %99 = vector.shape_cast %96 : vector<8x32xf32> to vector<1x8x32xf32>
    tpu.vector_store %arg4[%c0_39, %c0_40, %c0_41], %99 {strides = array<i32>} : memref<1x8x32xf32, #tpu.memory_space<vmem>>, vector<1x8x32xf32>,
    return
  }
  func.func @transform_0(%arg0: i32) -> (i32, i32, i32) {
    %c0_i32 = arith.constant 0 : i32
    %c0_i32_0 = arith.constant 0 : i32
    %c0_i32_1 = arith.constant 0 : i32
    return %arg0, %c0_i32, %c0_i32_0 : i32, i32, i32
  }
  func.func @transform_1(%arg0: i32) -> (i32, i32, i32) {
    %c0_i32 = arith.constant 0 : i32
    %c0_i32_0 = arith.constant 0 : i32
    %c0_i32_1 = arith.constant 0 : i32
    return %arg0, %c0_i32, %c0_i32_0 : i32, i32, i32
  }
  func.func @transform_2(%arg0: i32) -> (i32, i32) {
    %c0_i32 = arith.constant 0 : i32
    %c0_i32_0 = arith.constant 0 : i32
    %c0_i32_1 = arith.constant 0 : i32
    return %c0_i32, %c0_i32_0 : i32, i32
  }
  func.func @transform_3(%arg0: i32) -> (i32, i32, i32) {
    %c0_i32 = arith.constant 0 : i32
    %c0_i32_0 = arith.constant 0 : i32
    %c0_i32_1 = arith.constant 0 : i32
    return %arg0, %c0_i32, %c0_i32_0 : i32, i32, i32
  }
}

</mosaic_0001>

<bundles_post_ra>
// kernel: tpu_custom_call.1
= control target key start
LH: loop header
LB: loop body
LE: loop exit
PB: predicated region body
PF: predicated region fallthrough
CT: control target
= control target key end

     0   :  { %8 = vsyncpa [#allocation3], 0  ;;  %s830_s0 = inlined_call_operand.vmem [shape: f32[4,8,32], index: 0, kind: input, shape index: {}]   ;;  %s831_s1 = inlined_call_operand.vmem [shape: f32[4,8,1], index: 1, kind: input, shape index: {}]   ;;  %s832_s2 = inlined_call_operand.vmem [shape: f32[152,32], index: 2, kind: input, shape index: {}]   ;;  %s833_s3 = inlined_call_operand.hbm [shape: f32[4,8,32], index: 3, kind: output, shape index: {}]  }
   0x1   :  { %10 = vsyncpa [#allocation3 + $0x1], 0  ;;  %s651_s12 = smov 0   ;;  %s653_s13 = smov 0  }
   0x2   :  { %s655_s14 = smov 0   ;;  %s657_s15 = smov 0  }
   0x3 LB: > { %s672_s16 = sadd.s32 4294967295, %s627_s15   ;;  %s495_s17 = sadd.s32 4294967294, %s627_s15   ;;  %s627_s15 = sphi %s657_s15, %s839_s15   ;;  %s623_s14 = sphi %s655_s14, %s838_s14   ;;  %s619_s13 = sphi %s653_s13, %s837_s13   ;;  %s615_s12 = sphi %s651_s12, %s836_s12  }
   0x4   : > { %s676_s18 = sadd.s32 1, %s627_s15   ;;  %s96_s19 = sadd.s32 1, %s623_s14 }
   0x5   : > { %s93_s20 = ssub.s32 %s627_s15, %s676_s18  ;;  %p106_p0 = scmp.ne.s32.totalorder %s623_s14, %s619_s13 }
   0x6   : > { %p94_p1 = scmp.eq.s32.totalorder %s93_s20, 0  ;;  %p107_p2 = scmp.eq.s32.totalorder %s672_s16, 3 }
   0x7   : > { %p112_p3 = scmp.ne.s32.totalorder %s619_s13, %s615_s12  ;;  %p113_p4 = scmp.eq.s32.totalorder %s495_s17, 3 }
   0x8   : > { %s687_s21 = scalar_select %p94_p1, %s623_s14, %s96_s19  }
   0x9   : > { %p689_p5 = por %p107_p2, %p106_p0  ;;  %p693_p6 = por %p113_p4, %p112_p3 }
   0xa   : > { %p498_p7 = scmp.ge.s32.totalorder %s627_s15, 1  ;;  %p148_p8 = scmp.lt.s32.totalorder %s627_s15, 5 }
   0xc   : > { %p149_p9 = pnand %p498_p7, %p148_p8 }
   0xd   : > { %p175_p10 = scmp.lt.s32.totalorder (!%p149_p9), %s672_s16, 3  ;;  %s172_s24 = sand.u32 (!%p149_p9), 1, %s619_s13  }
   0xe   : > { %152 = sbr.rel (%p149_p9) target bundleno = 753 (0x2f1), region = 32  ;;  %s507_s25 = sshll.u32 (!%p149_p9), %s672_s16, 3 }
   0xf   : > { %s499_s26 = sshll.u32 (!%p149_p9), %s172_s24, 3  ;;  %s419_s29 = scalar_lea.hbm (!%p149_p9), %s833_s3, %s507_s25 }
  0x10   : > { %s423_s7 = sshll.u32 (!%p149_p9), %s419_s29, 4  ;;  %s424_s7 = int_to_ptr.hbm [resolvable:$true] %s423_s7 }
  0x11   : > { %s579_s8 = sshra.s32 (!%p149_p9), %s424_s7, 4  ;;  %s580_s8 = int_to_ptr.hbm [resolvable:$true] %s579_s8 }
  0x12   : > { %p586_p0 = scmp.lt.s32.totalorder (!%p149_p9), %s580_s8, %s833_s3 }
  0x13   : > { %v188_v0 = vld [vmem:[%s832_s2 + $0x10] sm:$0xff]  ;;  %v189_v1 = vld [vmem:[%s832_s2 + $0x18] sm:$0xff]  ;;  %v186_v2 = vld [vmem:[%s832_s2] sm:$0xff]  ;;  %v629_v5 = vmov 0   ;;  %s176_s5 = scalar_select %p175_p10, %s672_s16, 3  ;;  %vm201_vm0 = vcmask 261120  }
  0x14   : > { %v192_v3 = vpack.c.bf16 %v189_v1, %v188_v0  ;;  %v187_v4 = vld [vmem:[%s832_s2 + $0x8] sm:$0xff]  ;;  %551 = vset.pattern.permute.xlu0 %v629_v5  ;;  %v630_v10 = vmov 8.0   ;;  %v552_v11 = vld [vmem:[%s832_s2 + $0x20] ss:$0 sm:$0xff]  ;;  %v264_v37 = vld [vmem:[%s832_s2 + $0x38] sm:$0xff]  ;;  %s409_s16 = scalar_lea.sflag [#allocation3], %s172_s24 }
  0x15   : > { %v191_v6 = vpack.c.bf16 %v187_v4, %v186_v2  ;;  %s500_s6 = sshll.u32 %s176_s5, 3  ;;  %557 = vrcp.f32 %v630_v10  ;;  %v265_v38 = vld [vmem:[%s832_s2 + $0x40] sm:$0xff]  ;;  %v262_v41 = vld [vmem:[%s832_s2 + $0x28] sm:$0xff]  ;;  %v263_v42 = vld [vmem:[%s832_s2 + $0x30] sm:$0xff]  ;;  %s174_s5 = scalar_lea.vmem [#allocation2], %s499_s26 }
  0x16   : > { %211 = vmatpush.bf16.msra.mxu0 %v192_v3  ;;  %s178_s9 = scalar_lea.vmem %s830_s0, %s500_s6  ;;  %s182_s17 = scalar_lea.vmem %s831_s1, %s500_s6  ;;  %v268_v39 = vpack.c.bf16 %v265_v38, %v264_v37  ;;  %v267_v43 = vpack.c.bf16 %v263_v42, %v262_v41  ;;  %v218_v53 = vld [vmem:[%s832_s2 + $0x68] sm:$0x1]  ;;  %v553_v58 = vld [vmem:[%s832_s2 + $0x69] ss:$0 sm:$0xff]  ;;  %v554_v37 = vld [vmem:[%s832_s2 + $0x6b] ss:$0 sm:$0xff] }
  0x17   : > { %v184_v7 = vld [vmem:[%s178_s9] sm:$0xff]  ;;  %s421_s6 = sshll.u32 %s174_s5, 4  ;;  %s581_s9 = scalar_lea.hbm %s580_s8, 8  ;;  %s422_s6 = int_to_ptr.vmem [resolvable:$true] %s421_s6 }
  0x18   : > { %v185_v8 = vld [vmem:[%s182_s17] sm:$0xff]  ;;  %v190_v9 = vpack.c.bf16 %v184_v7, %v184_v7  ;;  %278 = vmatpush.bf16.msra.mxu1 %v268_v39  ;;  %p582_p11 = scmp.ne.s32.totalorder %s580_s8, %s581_s9  ;;  %s585_s17 = scalar_lea.hbm %s833_s3, 32 }
  0x19   : > { %196 = vperm.xlu0 %551, %v185_v8   ;;  %p587_p1 = scmp.lt.s32.totalorder %s585_s17, %s581_s9 }
  0x1a   : > { %212 = vmatpush.bf16.msra.mxu0 %v191_v6  ;;  %p583_p12 = pnand %p582_p11, %p689_p5 }
  0x1b   : > { %v558_v12 = vpop.eup %557  ;;  %p588_p2 = por %p587_p1, %p586_p0 }
  0x1c   : > { %v228_v15 = vmul.f32 8.0, %v558_v12  ;;  %vm232_vm1 = vweird.f32 %v558_v12  ;;  %279 = vmatpush.bf16.msra.mxu1 %v267_v43  ;;  %p584_p13 = pneg %p583_p12 }
  0x1d   : > { %502 = vmatmul.msk.bf16.vlgmr.msra.gmra.mxu0 %vm201_vm0, %v190_v9 }
  0x1e   : > { %v229_v18 = vsub.f32 1.0, %v228_v15  ;;  %v324_v15 = vld [vmem:[%s832_s2 + $0x58] sm:$0xff]  ;;  %p589_p3 = pnand %p588_p2, %p584_p13 }
  0x20   : > { %v230_v21 = vmul.f32 %v558_v12, %v229_v18 }
  0x22   : > { %v231_v25 = vadd.f32 %v558_v12, %v230_v21 }
  0x24   : > { %v724_v28 = vsel %vm232_vm1, %v558_v12, %v231_v25 }
  0x8b   : > { %v197_v13 = vpop.permute.xlu0 %196 }
  0x8c   : > { %v200_v14 = vmul.f32 %v552_v11, %v197_v13 }
  0x9a   : > { %v214_v16 = vpop.f32.mrf.mxu0 }
  0x9b   : > { %v215_v17 = vadd.f32 %v214_v16, %v200_v14  ;;  %v325_v16 = vld [vmem:[%s832_s2 + $0x60] sm:$0xff] }
  0x9d   : > { %v220_v19 = vsel %vm201_vm0, %v215_v17, 0.0 }
  0x9e   : > { %v221_v20 = vrot.slane %v220_v19, 4 }
  0xa0   : > { %v222_v22 = vadd.f32 %v221_v20, %v220_v19  ;;  %v322_v19 = vld [vmem:[%s832_s2 + $0x48] sm:$0xff]  ;;  %v323_v20 = vld [vmem:[%s832_s2 + $0x50] sm:$0xff] }
  0xa1   : > { %v327_v21 = vpack.c.bf16 %v323_v20, %v322_v19  ;;  %v556_v19 = vld [vmem:[%s832_s2 + $0x90] ss:$0 sm:$0xff] }
  0xa2   : > { %v223_v23 = vrot.slane %v222_v22, 2  ;;  %v216_v24 = vpop.f32.mrf.mxu0 }
  0xa4   : > { %v224_v26 = vadd.f32 %v223_v23, %v222_v22 }
  0xa6   : > { %v225_v27 = vrot.slane %v224_v26, 1 }
  0xa8   : > { %v226_v29 = vadd.f32 %v225_v27, %v224_v26 }
  0xaa   : > { %v234_v30 = vmul.f32 %v724_v28, %v226_v29 }
  0xac   : > { %v235_v31 = vsub.f32 %v215_v17, %v234_v30  ;;  %v328_v17 = vpack.c.bf16 %v325_v16, %v324_v15 }
  0xae   : > { %v236_v32 = vmul.f32 %v235_v31, %v235_v31  ;;  %338 = vmatpush.bf16.msra.mxu2 %v328_v17 }
  0xb0   : > { %v237_v33 = vsel %vm201_vm0, %v236_v32, 0.0  ;;  %v285_v32 = vld [vmem:[%s832_s2 + $0x6a] sm:$0x1] }
  0xb1   : > { %v238_v34 = vrot.slane %v237_v33, 4 }
  0xb2   : > { %339 = vmatpush.bf16.msra.mxu2 %v327_v21 }
  0xb3   : > { %v239_v35 = vadd.f32 %v238_v34, %v237_v33 }
  0xb5   : > { %v240_v36 = vrot.slane %v239_v35, 2 }
  0xb7   : > { %v241_v40 = vadd.f32 %v240_v36, %v239_v35 }
  0xb9   : > { %v242_v44 = vrot.slane %v241_v40, 1 }
  0xbb   : > { %v243_v45 = vadd.f32 %v242_v44, %v241_v40 }
  0xbd   : > { %v244_v46 = vmul.f32 %v243_v45, %v724_v28 }
  0xbf   : > { %v245_v47 = vadd.f32 1e-05, %v244_v46 }
  0xc1   : > { %559 = vrsqrt.f32 %v245_v47  ;;  %vm252_vm3 = vweird.f32 %v245_v47 }
  0xc7   : > { %v560_v48 = vpop.eup %559 }
  0xc8   : > { %v247_v49 = vmul.f32 %v560_v48, %v245_v47  ;;  %vm253_vm2 = vweird.f32 %v560_v48 }
  0xc9   : > { %vm254_vm4 = vmor %vm252_vm3, %vm253_vm2 }
  0xca   : > { %v248_v50 = vmul.f32 %v560_v48, %v247_v49 }
  0xcc   : > { %v249_v51 = vmul.f32 0.5, %v248_v50 }
  0xce   : > { %v250_v52 = vsub.f32 1.5, %v249_v51 }
  0xd0   : > { %v251_v54 = vmul.f32 %v560_v48, %v250_v52 }
  0xd2   : > { %v255_v55 = vsel %vm254_vm4, %v560_v48, %v251_v54 }
  0xd3   : > { %v256_v56 = vmul.f32 %v255_v55, %v218_v53 }
  0xd5   : > { %v257_v57 = vperm.slane %v256_v56, 0 }
  0xd7   : > { %v258_v59 = vmul.f32 %v257_v57, %v235_v31 }
  0xd9   : > { %v260_v60 = vadd.f32 %v553_v58, %v258_v59  ;;  %v384_v58 = vld [vmem:[%s832_s2 + $0x80] sm:$0xff]  ;;  %v385_v59 = vld [vmem:[%s832_s2 + $0x88] sm:$0xff] }
  0xdb   : > { %v261_v61 = vmax.f32 %v260_v60, 0.0  ;;  %v388_v60 = vpack.c.bf16 %v385_v59, %v384_v58 }
  0xdd   : > { %v266_v62 = vpack.c.bf16 %v261_v61, %v261_v61  ;;  %400 = vmatpush.bf16.msra.mxu3 %v388_v60 }
  0xdf   : > { %503 = vmatmul.msk.bf16.vlgmr.msra.gmra.mxu1 %vm201_vm0, %v266_v62  ;;  %v382_v62 = vld [vmem:[%s832_s2 + $0x70] sm:$0xff] }
 0x15c   : > { %v281_v63 = vpop.f32.mrf.mxu1 }
 0x15d   : > { %v287_v0 = vsel %vm201_vm0, %v281_v63, 0.0 }
 0x15e   : > { %v288_v1 = vrot.slane %v287_v0, 4 }
 0x160   : > { %v289_v2 = vadd.f32 %v288_v1, %v287_v0 }
 0x162   : > { %v290_v3 = vrot.slane %v289_v2, 2 }
 0x164   : > { %v291_v4 = vadd.f32 %v290_v3, %v289_v2  ;;  %v283_v5 = vpop.f32.mrf.mxu1 }
 0x166   : > { %v292_v6 = vrot.slane %v291_v4, 1 }
 0x168   : > { %v293_v7 = vadd.f32 %v292_v6, %v291_v4 }
 0x16a   : > { %v294_v8 = vmul.f32 %v293_v7, %v724_v28 }
 0x16c   : > { %v295_v9 = vsub.f32 %v281_v63, %v294_v8  ;;  %v383_v63 = vld [vmem:[%s832_s2 + $0x78] sm:$0xff] }
 0x16d   : > { %v387_v0 = vpack.c.bf16 %v383_v63, %v382_v62 }
 0x16e   : > { %v296_v10 = vmul.f32 %v295_v9, %v295_v9 }
 0x16f   : > { %401 = vmatpush.bf16.msra.mxu3 %v387_v0 }
 0x170   : > { %v297_v11 = vsel %vm201_vm0, %v296_v10, 0.0  ;;  %v345_v10 = vld [vmem:[%s832_s2 + $0x6c] sm:$0x1] }
 0x171   : > { %v298_v12 = vrot.slane %v297_v11, 4 }
 0x173   : > { %v299_v13 = vadd.f32 %v298_v12, %v297_v11 }
 0x175   : > { %v300_v14 = vrot.slane %v299_v13, 2 }
 0x177   : > { %v301_v18 = vadd.f32 %v300_v14, %v299_v13  ;;  %v555_v14 = vld [vmem:[%s832_s2 + $0x6d] ss:$0 sm:$0xff] }
 0x179   : > { %v302_v22 = vrot.slane %v301_v18, 1 }
 0x17b   : > { %v303_v23 = vadd.f32 %v302_v22, %v301_v18 }
 0x17d   : > { %v304_v24 = vmul.f32 %v303_v23, %v724_v28 }
 0x17f   : > { %v305_v25 = vadd.f32 1e-05, %v304_v24 }
 0x181   : > { %561 = vrsqrt.f32 %v305_v25  ;;  %vm312_vm6 = vweird.f32 %v305_v25 }
 0x187   : > { %v562_v26 = vpop.eup %561 }
 0x188   : > { %v307_v27 = vmul.f32 %v562_v26, %v305_v25  ;;  %vm313_vm5 = vweird.f32 %v562_v26 }
 0x189   : > { %vm314_vm7 = vmor %vm312_vm6, %vm313_vm5 }
 0x18a   : > { %v308_v29 = vmul.f32 %v562_v26, %v307_v27 }
 0x18c   : > { %v309_v30 = vmul.f32 0.5, %v308_v29 }
 0x18e   : > { %v310_v31 = vsub.f32 1.5, %v309_v30 }
 0x190   : > { %v311_v33 = vmul.f32 %v562_v26, %v310_v31 }
 0x192   : > { %v315_v34 = vsel %vm314_vm7, %v562_v26, %v311_v33 }
 0x193   : > { %v316_v35 = vmul.f32 %v315_v34, %v285_v32 }
 0x195   : > { %v317_v36 = vperm.slane %v316_v35, 0 }
 0x197   : > { %v318_v38 = vmul.f32 %v317_v36, %v295_v9 }
 0x199   : > { %v320_v39 = vadd.f32 %v554_v37, %v318_v38 }
 0x19b   : > { %v321_v40 = vmax.f32 %v320_v39, 0.0 }
 0x19d   : > { %v326_v41 = vpack.c.bf16 %v321_v40, %v321_v40 }
 0x19f   : > { %504 = vmatmul.msk.bf16.vlgmr.msra.gmra.mxu2 %vm201_vm0, %v326_v41 }
 0x222   : > { %v341_v42 = vpop.f32.mrf.mxu2 }
 0x223   : > { %v347_v43 = vsel %vm201_vm0, %v341_v42, 0.0 }
 0x224   : > { %v348_v44 = vrot.slane %v347_v43, 4 }
 0x226   : > { %v349_v45 = vadd.f32 %v348_v44, %v347_v43 }
 0x228   : > { %v350_v46 = vrot.slane %v349_v45, 2 }
 0x22a   : > { %v351_v47 = vadd.f32 %v350_v46, %v349_v45  ;;  %v343_v48 = vpop.f32.mrf.mxu2 }
 0x22c   : > { %v352_v49 = vrot.slane %v351_v47, 1 }
 0x22e   : > { %v353_v50 = vadd.f32 %v352_v49, %v351_v47 }
 0x230   : > { %v354_v51 = vmul.f32 %v353_v50, %v724_v28 }
 0x232   : > { %v355_v52 = vsub.f32 %v341_v42, %v354_v51 }
 0x234   : > { %v356_v53 = vmul.f32 %v355_v52, %v355_v52 }
 0x236   : > { %v357_v54 = vsel %vm201_vm0, %v356_v53, 0.0 }
 0x237   : > { %v358_v55 = vrot.slane %v357_v54, 4 }
 0x239   : > { %v359_v56 = vadd.f32 %v358_v55, %v357_v54 }
 0x23b   : > { %v360_v57 = vrot.slane %v359_v56, 2 }
 0x23d   : > { %v361_v61 = vadd.f32 %v360_v57, %v359_v56 }
 0x23f   : > { %v362_v1 = vrot.slane %v361_v61, 1 }
 0x241   : > { %v363_v2 = vadd.f32 %v362_v1, %v361_v61 }
 0x243   : > { %v364_v3 = vmul.f32 %v363_v2, %v724_v28 }
 0x245   : > { %v365_v4 = vadd.f32 1e-05, %v364_v3 }
 0x247   : > { %563 = vrsqrt.f32 %v365_v4  ;;  %vm372_vm9 = vweird.f32 %v365_v4 }
 0x24d   : > { %v564_v5 = vpop.eup %563 }
 0x24e   : > { %v367_v6 = vmul.f32 %v564_v5, %v365_v4  ;;  %vm373_vm8 = vweird.f32 %v564_v5 }
 0x24f   : > { %vm374_vm10 = vmor %vm372_vm9, %vm373_vm8 }
 0x250   : > { %v368_v7 = vmul.f32 %v564_v5, %v367_v6 }
 0x252   : > { %v369_v8 = vmul.f32 0.5, %v368_v7 }
 0x254   : > { %v370_v9 = vsub.f32 1.5, %v369_v8 }
 0x256   : > { %v371_v11 = vmul.f32 %v564_v5, %v370_v9 }
 0x258   : > { %v375_v12 = vsel %vm374_vm10, %v564_v5, %v371_v11 }
 0x259   : > { %v376_v13 = vmul.f32 %v375_v12, %v345_v10 }
 0x25b   : > { %v377_v28 = vperm.slane %v376_v13, 0 }
 0x25d   : > { %v378_v15 = vmul.f32 %v377_v28, %v355_v52 }
 0x25f   : > { %v380_v16 = vadd.f32 %v555_v14, %v378_v15 }
 0x261   : > { %v381_v17 = vmax.f32 %v380_v16, 0.0 }
 0x263   : > { %v386_v18 = vpack.c.bf16 %v381_v17, %v381_v17 }
 0x265   : > { %505 = vmatmul.msk.bf16.vlgmr.msra.gmra.mxu3 %vm201_vm0, %v386_v18 }
 0x2e8   : > { %v403_v20 = vpop.f32.mrf.mxu3 }
 0x2e9   : > { %v404_v21 = vadd.f32 %v556_v19, %v403_v20 }
 0x2eb   : > { %407 = vst.msk [vmem:[%s174_s5] sm:$0xff] %vm201_vm0, %v404_v21 }
 0x2ec   : > { %592 = shalt.err (!%p589_p3)
}
 0x2ed   : > { %510 = dma.vmem_to_hbm [thread:$0]  (%p689_p5), %s422_s6, 128, %s424_s7, %s409_s16  }
 0x2f0   : > { %v405_v22 = vpop.f32.mrf.mxu3 }
 0x2f1 PF: > { %p516_p4 = scmp.ge.s32.totalorder %s627_s15, 2  ;;  %s435_s24 = sand.u32 1, %s615_s12  }
 0x2f2   : > { %s436_s25 = scalar_lea.sflag [#allocation3], %s435_s24 }
 0x2f3   : > { %p513_p7 = pnand %p516_p4, %p693_p6 }
 0x2f5   : > { %p514_p8 = pneg %p513_p7 }
 0x2f7   : > { %610 = dma.done.wait (%p514_p8), %s436_s25, 128  }
 0x2f8   : > { %612 = vsyncadd (%p514_p8), %s436_s25, 4294967168  ;;  %p13_p9 = scmp.ge.s32.totalorder %s676_s18, 6   ;;  %s836_s12 = smov %s619_s13 }
 0x2f9   : > { %s837_s13 = smov %s623_s14  ;;  %s838_s14 = smov %s687_s21 }
 0x2fa   : > { %s839_s15 = smov %s676_s18  ;;  %15 = sbr.rel (!%p13_p9) target bundleno = 3 (0x3), region = 70 }
 0x2ff   :  { %442 = vsyncpa [#allocation3], 1 }
 0x300   :  { %444 = vsyncpa [#allocation3 + $0x1], 1 }

</bundles_post_ra>
